<compile_context>
chip_gen: v7x
topology: tpu7x:2x2x1
jax: 0.10.0
libtpu: 0.0.40
codegen_flags: <defaults>
</compile_context>

<pallas_src>
import functools

import jax
import jax.numpy as jnp
from jax.experimental import pallas as pl
from jax.experimental.pallas import tpu as pltpu


def _round_up(x, m):
    return (x + m - 1) // m * m


def _critic_td3_kernel(s_ref, a_ref, pw_ref, pb_ref, out_ref, *,
                       state_dim, action_dim, compute_dtype):
    s = s_ref[...]                                   # (TB, state_dim)
    a = a_ref[...]                                   # (TB, action_dim)

    # Layer 1:  cat([state, action]) @ W1  ==  state @ W1[:sd] + action @ W1[sd:]
    h = jnp.dot(s, pw_ref[0, :state_dim, :], preferred_element_type=jnp.float32)
    h = h + jnp.dot(a, pw_ref[1, :action_dim, :], preferred_element_type=jnp.float32)
    h = jnp.maximum(h + pb_ref[0:1, :], 0.0)         # (TB, OUT_PAD), f32

    # Layers 2 / 3: Linear + ReLU (matmul operands in compute_dtype, f32 acc).
    h = jnp.dot(h.astype(compute_dtype), pw_ref[2, :h.shape[1], :],
                preferred_element_type=jnp.float32)
    h = jnp.maximum(h + pb_ref[1:2, :], 0.0)
    h = jnp.dot(h.astype(compute_dtype), pw_ref[3, :h.shape[1], :],
                preferred_element_type=jnp.float32)
    h = jnp.maximum(h + pb_ref[2:3, :], 0.0)

    # Layer 4: final linear, no activation.
    q = jnp.dot(h.astype(compute_dtype), pw_ref[4, :h.shape[1], :],
                preferred_element_type=jnp.float32)
    q = q + pb_ref[3:4, :]

    # Only the first num_actions lanes are real (rest are zero padding).
    out_ref[...] = q[:, :out_ref.shape[1]].astype(out_ref.dtype)


def pack_critic_params(params, state_dim, action_dim, compute_dtype=jnp.bfloat16):
    """Pack (w1,b1,...,w4,b4) with Wk:(in,out), bk:(1,out) into two padded stacks.

    Returns:
      pw: (5, IN_PAD, OUT_PAD) compute_dtype  = [w1_state, w1_action, w2, w3, w4]
      pb: (4, OUT_PAD)         float32        = [b1, b2, b3, b4]
    Zero padding keeps the extra lanes/rows inert through every layer.
    """
    w1, b1, w2, b2, w3, b3, w4, b4 = params
    w1_s = w1[:state_dim]
    w1_a = w1[state_dim:state_dim + action_dim]
    weights = [w1_s, w1_a, w2, w3, w4]
    biases = [b1, b2, b3, b4]

    out_pad = _round_up(max(w.shape[1] for w in weights), 128)
    in_pad = _round_up(max([out_pad] + [w.shape[0] for w in weights]), 8)

    pw = jnp.zeros((len(weights), in_pad, out_pad), dtype=compute_dtype)
    for i, w in enumerate(weights):
        pw = pw.at[i, :w.shape[0], :w.shape[1]].set(w.astype(compute_dtype))

    pb = jnp.zeros((len(biases), out_pad), dtype=jnp.float32)
    for i, b in enumerate(biases):
        pb = pb.at[i, :b.shape[1]].set(b[0].astype(jnp.float32))

    return pw, pb


def critic_td3_forward(state, action, pw, pb, num_actions, *, block_b=256):
    """Batch-tiled Pallas forward. pw/pb come from pack_critic_params."""
    compute_dtype = pw.dtype
    batch, state_dim = state.shape
    action_dim = action.shape[1]

    # Batch tile: multiple of 8 sublanes, clamped to (padded) batch size.
    tb = min(_round_up(block_b, 8), _round_up(batch, 8))
    grid = (pl.cdiv(batch, tb),)

    kernel = functools.partial(
        _critic_td3_kernel,
        state_dim=state_dim,
        action_dim=action_dim,
        compute_dtype=compute_dtype,
    )

    return pl.pallas_call(
        kernel,
        out_shape=jax.ShapeDtypeStruct((batch, num_actions), jnp.float32),
        grid=grid,
        in_specs=[
            pl.BlockSpec((tb, state_dim), lambda i: (i, 0)),     # streamed
            pl.BlockSpec((tb, action_dim), lambda i: (i, 0)),    # streamed
            pl.BlockSpec(pw.shape, lambda i: (0, 0, 0)),         # resident weights
            pl.BlockSpec(pb.shape, lambda i: (0, 0)),            # resident biases
        ],
        out_specs=pl.BlockSpec((tb, num_actions), lambda i: (i, 0)),
        compiler_params=pltpu.CompilerParams(
            dimension_semantics=("parallel",)),
    )(state.astype(compute_dtype), action.astype(compute_dtype), pw, pb)


def init_linear_params(key, fan_in, fan_out):
    """PyTorch nn.Linear default init: U(-1/sqrt(fan_in), 1/sqrt(fan_in))."""
    k_w, k_b = jax.random.split(key)
    bound = 1.0 / jnp.sqrt(float(fan_in))
    # stored as (in, out) == transpose of PyTorch's (out, in)
    w = jax.random.uniform(k_w, (fan_in, fan_out), jnp.float32, -bound, bound)
    b = jax.random.uniform(k_b, (1, fan_out), jnp.float32, -bound, bound)
    return w, b


def reference_forward(state, action, params):
    """Pure-JAX f32 reference mirroring the PyTorch module semantics."""
    w1, b1, w2, b2, w3, b3, w4, b4 = params
    x = jnp.concatenate([state, action], axis=1)
    x = jnp.maximum(x @ w1 + b1, 0.0)
    x = jnp.maximum(x @ w2 + b2, 0.0)
    x = jnp.maximum(x @ w3 + b3, 0.0)
    return x @ w4 + b4


if __name__ == "__main__":
    state_dim, action_dim = 12, 4
    input_size = state_dim + action_dim          # matches cat([state, action], dim=1)
    hidden = (32, 32, 32)
    num_actions = 1                              # critic outputs one Q per sample

    root = jax.random.PRNGKey(0)
    k_s, k_a, k1, k2, k3, k4, k_s2, k_a2 = jax.random.split(root, 8)

    w1, b1 = init_linear_params(k1, input_size, hidden[0])
    w2, b2 = init_linear_params(k2, hidden[0], hidden[1])
    w3, b3 = init_linear_params(k3, hidden[1], hidden[2])
    w4, b4 = init_linear_params(k4, hidden[2], num_actions)
    params = (w1, b1, w2, b2, w3, b3, w4, b4)

    # --- Test 1: small batch, f32 params, tight tolerance vs pure-JAX ref ---
    batch = 8
    state = jax.random.normal(k_s, (batch, state_dim), jnp.float32)
    action = jax.random.normal(k_a, (batch, action_dim), jnp.float32)

    pw32, pb32 = pack_critic_params(params, state_dim, action_dim, jnp.float32)
    q32 = jax.block_until_ready(
        critic_td3_forward(state, action, pw32, pb32, num_actions))
    q_ref = reference_forward(state, action, params)
    assert q32.shape == (batch, num_actions)
    assert jnp.allclose(q32, q_ref, atol=1e-5, rtol=1e-5), "f32 kernel mismatch"

    # --- Test 2: batch grid (multiple tiles) + bf16 operands, f32 accumulate ---
    batch2 = 512
    state2 = jax.random.normal(k_s2, (batch2, state_dim), jnp.float32)
    action2 = jax.random.normal(k_a2, (batch2, action_dim), jnp.float32)

    pwbf, pbbf = pack_critic_params(params, state_dim, action_dim, jnp.bfloat16)
    qbf = jax.block_until_ready(
        critic_td3_forward(state2, action2, pwbf, pbbf, num_actions, block_b=128))
    q_ref2 = reference_forward(state2, action2, params)
    assert qbf.shape == (batch2, num_actions)
    assert jnp.allclose(qbf, q_ref2, atol=5e-2, rtol=5e-2), "bf16 kernel mismatch"

    print("KERNEL_OK")
</pallas_src>

<mosaic_0001>
module attributes {stable_mosaic.version = 11 : i64} {
  func.func @_critic_td3_kernel(%arg0: i32, %arg1: memref<8x12xf32, #tpu.memory_space<vmem>>, %arg2: memref<8x4xf32, #tpu.memory_space<vmem>>, %arg3: memref<5x128x128xf32, #tpu.memory_space<vmem>>, %arg4: memref<4x128xf32, #tpu.memory_space<vmem>>, %arg5: memref<8x1xf32, #tpu.memory_space<vmem>>) attributes {dimension_semantics = [#tpu.dimension_semantics<parallel>], iteration_bounds = array<i64: 1>, scalar_prefetch = 0 : i64, scratch_operands = 0 : i64, tpu.core_type = #tpu.core_type<tc>, window_params = [{transform_indices = @transform_0, window_bounds = array<i64: 8, 12>}, {transform_indices = @transform_1, window_bounds = array<i64: 8, 4>}, {pipeline_mode = #tpu.pipeline_mode<synchronous>, transform_indices = @transform_2, window_bounds = array<i64: 5, 128, 128>}, {pipeline_mode = #tpu.pipeline_mode<synchronous>, transform_indices = @transform_3, window_bounds = array<i64: 4, 128>}, {transform_indices = @transform_4, window_bounds = array<i64: 8, 1>}]} {
    %c0 = arith.constant 0 : index
    %c0_0 = arith.constant 0 : index
    %0 = vector.load %arg1[%c0, %c0_0] : memref<8x12xf32, #tpu.memory_space<vmem>>, vector<8x12xf32>
    %c0_1 = arith.constant 0 : index
    %c0_2 = arith.constant 0 : index
    %1 = vector.load %arg2[%c0_1, %c0_2] : memref<8x4xf32, #tpu.memory_space<vmem>>, vector<8x4xf32>
    %c0_3 = arith.constant 0 : index
    %c0_4 = arith.constant 0 : index
    %c0_5 = arith.constant 0 : index
    %2 = vector.load %arg3[%c0_3, %c0_4, %c0_5] : memref<5x128x128xf32, #tpu.memory_space<vmem>>, vector<1x12x128xf32>
    %3 = vector.shape_cast %2 : vector<1x12x128xf32> to vector<12x128xf32>
    %cst = arith.constant dense<0.000000e+00> : vector<8x128xf32>
    %4 = tpu.matmul %0, %3, %cst {dimension_numbers = #tpu.dot_dimension_numbers<[1], [0], [0], [1], [0, 0, 1, 1], [], []>} : vector<8x12xf32>, vector<12x128xf32>, vector<8x128xf32> -> vector<8x128xf32>
    %c1 = arith.constant 1 : index
    %c0_6 = arith.constant 0 : index
    %c0_7 = arith.constant 0 : index
    %5 = vector.load %arg3[%c1, %c0_6, %c0_7] : memref<5x128x128xf32, #tpu.memory_space<vmem>>, vector<1x4x128xf32>
    %6 = vector.shape_cast %5 : vector<1x4x128xf32> to vector<4x128xf32>
    %cst_8 = arith.constant dense<0.000000e+00> : vector<8x128xf32>
    %7 = tpu.matmul %1, %6, %cst_8 {dimension_numbers = #tpu.dot_dimension_numbers<[1], [0], [0], [1], [0, 0, 1, 1], [], []>} : vector<8x4xf32>, vector<4x128xf32>, vector<8x128xf32> -> vector<8x128xf32>
    %8 = arith.addf %4, %7 : vector<8x128xf32>
    %c0_9 = arith.constant 0 : index
    %c0_10 = arith.constant 0 : index
    %9 = vector.load %arg4[%c0_9, %c0_10] : memref<4x128xf32, #tpu.memory_space<vmem>>, vector<1x128xf32>
    %10 = vector.broadcast %9 : vector<1x128xf32> to vector<8x128xf32>
    %11 = arith.addf %8, %10 : vector<8x128xf32>
    %cst_11 = arith.constant 0.000000e+00 : f32
    %12 = vector.broadcast %cst_11 : f32 to vector<8x128xf32>
    %13 = arith.maximumf %11, %12 : vector<8x128xf32>
    %c2 = arith.constant 2 : index
    %c0_12 = arith.constant 0 : index
    %c0_13 = arith.constant 0 : index
    %14 = vector.load %arg3[%c2, %c0_12, %c0_13] : memref<5x128x128xf32, #tpu.memory_space<vmem>>, vector<1x128x128xf32>
    %15 = vector.shape_cast %14 : vector<1x128x128xf32> to vector<128x128xf32>
    %cst_14 = arith.constant dense<0.000000e+00> : vector<8x128xf32>
    %16 = tpu.matmul %13, %15, %cst_14 {dimension_numbers = #tpu.dot_dimension_numbers<[1], [0], [0], [1], [0, 0, 1, 1], [], []>} : vector<8x128xf32>, vector<128x128xf32>, vector<8x128xf32> -> vector<8x128xf32>
    %c1_15 = arith.constant 1 : index
    %c0_16 = arith.constant 0 : index
    %17 = vector.load %arg4[%c1_15, %c0_16] : memref<4x128xf32, #tpu.memory_space<vmem>>, vector<1x128xf32>
    %18 = vector.broadcast %17 : vector<1x128xf32> to vector<8x128xf32>
    %19 = arith.addf %16, %18 : vector<8x128xf32>
    %cst_17 = arith.constant 0.000000e+00 : f32
    %20 = vector.broadcast %cst_17 : f32 to vector<8x128xf32>
    %21 = arith.maximumf %19, %20 : vector<8x128xf32>
    %c3 = arith.constant 3 : index
    %c0_18 = arith.constant 0 : index
    %c0_19 = arith.constant 0 : index
    %22 = vector.load %arg3[%c3, %c0_18, %c0_19] : memref<5x128x128xf32, #tpu.memory_space<vmem>>, vector<1x128x128xf32>
    %23 = vector.shape_cast %22 : vector<1x128x128xf32> to vector<128x128xf32>
    %cst_20 = arith.constant dense<0.000000e+00> : vector<8x128xf32>
    %24 = tpu.matmul %21, %23, %cst_20 {dimension_numbers = #tpu.dot_dimension_numbers<[1], [0], [0], [1], [0, 0, 1, 1], [], []>} : vector<8x128xf32>, vector<128x128xf32>, vector<8x128xf32> -> vector<8x128xf32>
    %c2_21 = arith.constant 2 : index
    %c0_22 = arith.constant 0 : index
    %25 = vector.load %arg4[%c2_21, %c0_22] : memref<4x128xf32, #tpu.memory_space<vmem>>, vector<1x128xf32>
    %26 = vector.broadcast %25 : vector<1x128xf32> to vector<8x128xf32>
    %27 = arith.addf %24, %26 : vector<8x128xf32>
    %cst_23 = arith.constant 0.000000e+00 : f32
    %28 = vector.broadcast %cst_23 : f32 to vector<8x128xf32>
    %29 = arith.maximumf %27, %28 : vector<8x128xf32>
    %c4 = arith.constant 4 : index
    %c0_24 = arith.constant 0 : index
    %c0_25 = arith.constant 0 : index
    %30 = vector.load %arg3[%c4, %c0_24, %c0_25] : memref<5x128x128xf32, #tpu.memory_space<vmem>>, vector<1x128x128xf32>
    %31 = vector.shape_cast %30 : vector<1x128x128xf32> to vector<128x128xf32>
    %cst_26 = arith.constant dense<0.000000e+00> : vector<8x128xf32>
    %32 = tpu.matmul %29, %31, %cst_26 {dimension_numbers = #tpu.dot_dimension_numbers<[1], [0], [0], [1], [0, 0, 1, 1], [], []>} : vector<8x128xf32>, vector<128x128xf32>, vector<8x128xf32> -> vector<8x128xf32>
    %c3_27 = arith.constant 3 : index
    %c0_28 = arith.constant 0 : index
    %33 = vector.load %arg4[%c3_27, %c0_28] : memref<4x128xf32, #tpu.memory_space<vmem>>, vector<1x128xf32>
    %34 = vector.broadcast %33 : vector<1x128xf32> to vector<8x128xf32>
    %35 = arith.addf %32, %34 : vector<8x128xf32>
    %36 = vector.extract_strided_slice %35 {offsets = [0, 0], sizes = [8, 1], strides = [1, 1]} : vector<8x128xf32> to vector<8x1xf32>
    %c0_29 = arith.constant 0 : index
    %c0_30 = arith.constant 0 : index
    %37 = vector.load %arg5[%c0_29, %c0_30] : memref<8x1xf32, #tpu.memory_space<vmem>>, vector<8x1xf32>
    tpu.vector_store %arg5[%c0_29, %c0_30], %36 {strides = array<i32>} : memref<8x1xf32, #tpu.memory_space<vmem>>, vector<8x1xf32>,
    return
  }
  func.func @transform_0(%arg0: i32) -> (i32, i32) {
    %c0_i32 = arith.constant 0 : i32
    %c0_i32_0 = arith.constant 0 : i32
    return %arg0, %c0_i32 : i32, i32
  }
  func.func @transform_1(%arg0: i32) -> (i32, i32) {
    %c0_i32 = arith.constant 0 : i32
    %c0_i32_0 = arith.constant 0 : i32
    return %arg0, %c0_i32 : i32, i32
  }
  func.func @transform_2(%arg0: i32) -> (i32, i32, i32) {
    %c0_i32 = arith.constant 0 : i32
    %c0_i32_0 = arith.constant 0 : i32
    %c0_i32_1 = arith.constant 0 : i32
    %c0_i32_2 = arith.constant 0 : i32
    return %c0_i32, %c0_i32_0, %c0_i32_1 : i32, i32, i32
  }
  func.func @transform_3(%arg0: i32) -> (i32, i32) {
    %c0_i32 = arith.constant 0 : i32
    %c0_i32_0 = arith.constant 0 : i32
    %c0_i32_1 = arith.constant 0 : i32
    return %c0_i32, %c0_i32_0 : i32, i32
  }
  func.func @transform_4(%arg0: i32) -> (i32, i32) {
    %c0_i32 = arith.constant 0 : i32
    %c0_i32_0 = arith.constant 0 : i32
    return %arg0, %c0_i32 : i32, i32
  }
}

</mosaic_0001>

<bundles_post_ra>
// kernel: tpu_custom_call.1
= control target key start
LH: loop header
LB: loop body
LE: loop exit
PB: predicated region body
PF: predicated region fallthrough
CT: control target
= control target key end

     0   :  { %9 = vsyncpa [#allocation3], 0  ;;  %s772_s15 = smov [#allocation2]   ;;  %s873_s0 = inlined_call_operand.vmem [shape: f32[8,12], index: 0, kind: input, shape index: {}]   ;;  %s874_s1 = inlined_call_operand.vmem [shape: f32[8,4], index: 1, kind: input, shape index: {}]   ;;  %s875_s2 = inlined_call_operand.hbm [shape: f32[5,128,128], index: 2, kind: input, shape index: {}]   ;;  %s876_s3 = inlined_call_operand.vmem [shape: f32[4,128], index: 3, kind: input, shape index: {}]   ;;  %s877_s4 = inlined_call_operand.vmem [shape: f32[8,1], index: 4, kind: output, shape index: {}]  }
   0x1   :  { %s19_s16 = sshll.u32 %s772_s15, 4  ;;  %s748_s19 = scalar_lea.hbm %s875_s2, 10240  ;;  %s20_s16 = int_to_ptr.vmem [resolvable:$true] %s19_s16 }
   0x2   :  { %p749_p0 = scmp.ne.s32.totalorder %s875_s2, %s748_s19  ;;  %p752_p1 = scmp.lt.u32.totalorder %s748_s19, %s875_s2 }
   0x4   :  { %p754_p2 = pnand %p752_p1, %p749_p0 }
   0x6   :  { %757 = shalt.err (!%p754_p2)
}
   0x7   :  { %s758_s24 = scalar_lea.vmem %s20_s16, 10240  ;;  %p763_p4 = scmp.lt.s32.totalorder %s20_s16, %s20_s16 }
   0x8   :  { %p759_p3 = scmp.ne.s32.totalorder %s20_s16, %s758_s24  ;;  %p764_p5 = scmp.lt.s32.totalorder %s758_s24, %s758_s24 }
   0xa   :  { %p765_p6 = por %p764_p5, %p763_p4 }
   0xc   :  { %p766_p7 = pnand %p765_p6, %p759_p3 }
   0xe   :  { %769 = shalt.err (!%p766_p7)
}
   0xf   :  { %s773_s25 = smov 128   ;;  %s774_s26 = smov 8  }
  0x10   :  { %25 = dma.hbm_to_vmem [thread:$0]  %s875_s2, 10240, %s20_s16, [#allocation3], %s773_s25, %s773_s25, %s774_s26  }
  0x11   :  { %770 = dma.done.wait [#allocation3], 10240  }
  0x12   :  { %771 = vsyncadd [#allocation3], 4294957056  ;;  %v775_v0 = vmov 0.0   ;;  %vm776_vm0 = vmmov 0   ;;  %v777_v1 = vmov 0.0|0.0   ;;  %vm41_vm1 = vcmask 1043456  }
  0x13   :  { %548 = vmatprep.subr.mxu1 %v775_v0  ;;  %550 = vmatprep.mubr.msk.f32.mxu1 %vm776_vm0, %v775_v0  ;;  %vm37_vm2 = vcmask 31744   ;;  %v36_v2 = vld [vmem:[#allocation2 + $0x80] sm:$0xf]  ;;  %vm778_vm3 = vmmov 1   ;;  %v34_v5 = vld [vmem:[#allocation2 + $0x8] sm:$0xf] }
  0x14   :  { %669 = vmatprep.subr.bf16.mxu0 %v777_v1  ;;  %592 = vmatprep.mubr.msk.f32.mxu0 %vm776_vm0, %v775_v0  ;;  %v32_v3 = vld [vmem:[%s874_s1] sm:$0xff]  ;;  %vm667_vm4 = vmpackc.low %vm41_vm1, %vm778_vm3  ;;  %v201_v8 = vld [vmem:[#allocation2 + $0x108] sm:$0xff]  ;;  %vm115_vm5 = vcmask 97280   ;;  %vm477_vm6 = vcmask 7168  }
  0x15   :  { %v33_v4 = vld [vmem:[#allocation2] sm:$0xff]  ;;  %549 = vmatpush3.msk.msra.mxu1 %vm41_vm1, %v36_v2  ;;  %v202_v9 = vld [vmem:[#allocation2 + $0x110] sm:$0xff]  ;;  %v203_v10 = vld [vmem:[#allocation2 + $0x118] sm:$0xff] }
  0x16   :  { %v200_v6 = vld [vmem:[#allocation2 + $0x100] sm:$0xff]  ;;  %551 = vmatmul.mubr.msk.f32.vlgmr.msra.gmra.mrb[0].mxu1 %vm37_vm2, %v32_v3  ;;  %665 = vmatprep.subr.bf16.mxu1 %v777_v1  ;;  %v666_v7 = vpack.c.bf16 %v34_v5, %v33_v4  ;;  %v673_v13 = vpack.c.bf16 %v203_v10, %v202_v9  ;;  %v205_v15 = vld [vmem:[#allocation2 + $0x128] sm:$0xff]  ;;  %v206_v17 = vld [vmem:[#allocation2 + $0x130] sm:$0xff] }
  0x17   :  { %557 = vmatprep.mubr.msk.f32.mxu1 %vm776_vm0, %v775_v0  ;;  %v670_v11 = vpack.c.bf16 %v201_v8, %v200_v6  ;;  %v31_v12 = vld [vmem:[%s873_s0] sm:$0xff]  ;;  %v207_v18 = vld [vmem:[#allocation2 + $0x138] sm:$0xff]  ;;  %v209_v21 = vld [vmem:[#allocation2 + $0x148] sm:$0xff] }
  0x18   :  { %668 = vmatpush3.bf16.msk.msra.mxu1 %vm667_vm4, %v666_v7  ;;  %v204_v14 = vld [vmem:[#allocation2 + $0x120] sm:$0xff]  ;;  %v679_v19 = vpack.c.bf16 %v207_v18, %v206_v17  ;;  %v210_v23 = vld [vmem:[#allocation2 + $0x150] sm:$0xff]  ;;  %v211_v24 = vld [vmem:[#allocation2 + $0x158] sm:$0xff] }
  0x19   :  { %671 = vmatpush3.bf16.msra.mxu0 %v670_v11  ;;  %693 = vmatprep.subr.bf16.mxu1 %v777_v1  ;;  %v676_v16 = vpack.c.bf16 %v205_v15, %v204_v14  ;;  %v208_v20 = vld [vmem:[#allocation2 + $0x140] sm:$0xff]  ;;  %v685_v25 = vpack.c.bf16 %v211_v24, %v210_v23  ;;  %v213_v27 = vld [vmem:[#allocation2 + $0x168] sm:$0xff]  ;;  %v214_v29 = vld [vmem:[#allocation2 + $0x170] sm:$0xff] }
  0x1a   :  { %672 = vmatprep.subr.bf16.mxu0 %v777_v1  ;;  %v682_v22 = vpack.c.bf16 %v209_v21, %v208_v20  ;;  %v212_v26 = vld [vmem:[#allocation2 + $0x160] sm:$0xff]  ;;  %v215_v30 = vld [vmem:[#allocation2 + $0x178] sm:$0xff]  ;;  %v294_v33 = vld [vmem:[#allocation2 + $0x188] sm:$0xff] }
  0x1b   :  { %558 = vmatmul.mubr.msk.f32.vlgmr.msra.gmra.mrb[2].mxu1 %vm115_vm5, %v31_v12  ;;  %v688_v28 = vpack.c.bf16 %v213_v27, %v212_v26  ;;  %v691_v31 = vpack.c.bf16 %v215_v30, %v214_v29  ;;  %v293_v32 = vld [vmem:[#allocation2 + $0x180] sm:$0xff]  ;;  %v295_v34 = vld [vmem:[#allocation2 + $0x190] sm:$0xff]  ;;  %v296_v36 = vld [vmem:[#allocation2 + $0x198] sm:$0xff] }
  0x1c   :  { %627 = vmatprep.mubr.msk.f32.mxu1 %vm776_vm0, %v775_v0  ;;  %v694_v35 = vpack.c.bf16 %v294_v33, %v293_v32  ;;  %v697_v37 = vpack.c.bf16 %v296_v36, %v295_v34  ;;  %v297_v38 = vld [vmem:[#allocation2 + $0x1a0] sm:$0xff]  ;;  %v298_v39 = vld [vmem:[#allocation2 + $0x1a8] sm:$0xff]  ;;  %v299_v41 = vld [vmem:[#allocation2 + $0x1b0] sm:$0xff] }
  0x1d   :  { %674 = vmatpush3.bf16.msra.mxu0 %v673_v13  ;;  %v700_v40 = vpack.c.bf16 %v298_v39, %v297_v38  ;;  %v300_v42 = vld [vmem:[#allocation2 + $0x1b8] sm:$0xff]  ;;  %v301_v44 = vld [vmem:[#allocation2 + $0x1c0] sm:$0xff]  ;;  %v302_v45 = vld [vmem:[#allocation2 + $0x1c8] sm:$0xff] }
  0x1e   :  { %675 = vmatprep.subr.bf16.mxu0 %v777_v1  ;;  %695 = vmatpush3.bf16.msra.mxu1 %v694_v35  ;;  %v703_v43 = vpack.c.bf16 %v300_v42, %v299_v41  ;;  %v706_v46 = vpack.c.bf16 %v302_v45, %v301_v44  ;;  %v303_v47 = vld [vmem:[#allocation2 + $0x1d0] sm:$0xff]  ;;  %v304_v48 = vld [vmem:[#allocation2 + $0x1d8] sm:$0xff]  ;;  %v305_v50 = vld [vmem:[#allocation2 + $0x1e0] sm:$0xff] }
  0x1f   :  { %696 = vmatprep.subr.bf16.mxu1 %v777_v1  ;;  %v709_v49 = vpack.c.bf16 %v304_v48, %v303_v47  ;;  %v306_v51 = vld [vmem:[#allocation2 + $0x1e8] sm:$0xff]  ;;  %v488_v56 = vld [vmem:[%s876_s3] ss:$0 sm:$0xff]  ;;  %v307_v61 = vld [vmem:[#allocation2 + $0x1f0] sm:$0xff] }
  0x20   :  { %v712_v52 = vpack.c.bf16 %v306_v51, %v305_v50  ;;  %v308_v62 = vld [vmem:[#allocation2 + $0x1f8] sm:$0xff]  ;;  %v386_v2 = vld [vmem:[#allocation2 + $0x200] sm:$0xff]  ;;  %v387_v3 = vld [vmem:[#allocation2 + $0x208] sm:$0xff] }
  0x21   :  { %677 = vmatpush3.bf16.msra.mxu0 %v676_v16  ;;  %v715_v63 = vpack.c.bf16 %v308_v62, %v307_v61  ;;  %v388_v4 = vld [vmem:[#allocation2 + $0x210] sm:$0xff]  ;;  %v718_v5 = vpack.c.bf16 %v387_v3, %v386_v2  ;;  %v389_v6 = vld [vmem:[#allocation2 + $0x218] sm:$0xff]  ;;  %v390_v8 = vld [vmem:[#allocation2 + $0x220] sm:$0xff] }
  0x22   :  { %678 = vmatprep.subr.bf16.mxu0 %v777_v1  ;;  %698 = vmatpush3.bf16.msra.mxu1 %v697_v37  ;;  %v721_v7 = vpack.c.bf16 %v389_v6, %v388_v4  ;;  %v391_v9 = vld [vmem:[#allocation2 + $0x228] sm:$0xff]  ;;  %v393_v11 = vld [vmem:[#allocation2 + $0x238] sm:$0xff]  ;;  %v394_v13 = vld [vmem:[#allocation2 + $0x240] sm:$0xff] }
  0x23   :  { %699 = vmatprep.subr.bf16.mxu1 %v777_v1  ;;  %v724_v10 = vpack.c.bf16 %v391_v9, %v390_v8  ;;  %v395_v14 = vld [vmem:[#allocation2 + $0x248] sm:$0xff]  ;;  %v396_v16 = vld [vmem:[#allocation2 + $0x250] sm:$0xff]  ;;  %v397_v17 = vld [vmem:[#allocation2 + $0x258] sm:$0xff] }
  0x24   :  { %v730_v15 = vpack.c.bf16 %v395_v14, %v394_v13  ;;  %v733_v18 = vpack.c.bf16 %v397_v17, %v396_v16  ;;  %v399_v20 = vld [vmem:[#allocation2 + $0x268] sm:$0xff]  ;;  %v400_v27 = vld [vmem:[#allocation2 + $0x270] sm:$0xff]  ;;  %v490_v30 = vld [vmem:[%s876_s3 + $0x2] ss:$0 sm:$0xff] }
  0x25   :  { %680 = vmatpush3.bf16.msra.mxu0 %v679_v19  ;;  %v398_v19 = vld [vmem:[#allocation2 + $0x260] sm:$0xff] }
  0x26   :  { %681 = vmatprep.subr.bf16.mxu0 %v777_v1  ;;  %701 = vmatpush3.bf16.msra.mxu1 %v700_v40  ;;  %v736_v21 = vpack.c.bf16 %v399_v20, %v398_v19  ;;  %v491_v34 = vld [vmem:[%s876_s3 + $0x3] ss:$0 sm:$0xff] }
  0x27   :  { %702 = vmatprep.subr.bf16.mxu1 %v777_v1 }
  0x29   :  { %683 = vmatpush3.bf16.msra.mxu0 %v682_v22  ;;  %v489_v22 = vld [vmem:[%s876_s3 + $0x1] ss:$0 sm:$0xff] }
  0x2a   :  { %684 = vmatprep.subr.bf16.mxu0 %v777_v1  ;;  %704 = vmatpush3.bf16.msra.mxu1 %v703_v43 }
  0x2b   :  { %705 = vmatprep.subr.bf16.mxu1 %v777_v1 }
  0x2d   :  { %686 = vmatpush3.bf16.msra.mxu0 %v685_v25 }
  0x2e   :  { %687 = vmatprep.subr.bf16.mxu0 %v777_v1  ;;  %707 = vmatpush3.bf16.msra.mxu1 %v706_v46 }
  0x2f   :  { %708 = vmatprep.subr.bf16.mxu1 %v777_v1 }
  0x31   :  { %689 = vmatpush3.bf16.msra.mxu0 %v688_v28  ;;  %v401_v28 = vld [vmem:[#allocation2 + $0x278] sm:$0xff] }
  0x32   :  { %690 = vmatprep.subr.bf16.mxu0 %v777_v1  ;;  %710 = vmatpush3.bf16.msra.mxu1 %v709_v49  ;;  %v739_v29 = vpack.c.bf16 %v401_v28, %v400_v27 }
  0x33   :  { %711 = vmatprep.subr.bf16.mxu1 %v777_v1 }
  0x35   :  { %692 = vmatpush3.bf16.msra.mxu0 %v691_v31 }
  0x36   :  { %717 = vmatprep.subr.bf16.mxu0 %v777_v1  ;;  %713 = vmatpush3.bf16.msra.mxu1 %v712_v52 }
  0x37   :  { %714 = vmatprep.subr.bf16.mxu1 %v777_v1 }
  0x3a   :  { %716 = vmatpush3.bf16.msra.mxu1 %v715_v63 }
  0xe9   :  { %v111_v53 = vpop.f32.mrb[0].mxu1 }
  0xea   :  { %v552_v54 = vpop.f32.mrb[1].mxu1 }
  0xee   :  { %v188_v55 = vpop.f32.mrb[2].mxu1 }
  0xef   :  { %v189_v57 = vadd.f32 %v188_v55, %v111_v53  ;;  %v559_v58 = vpop.f32.mrb[3].mxu1 }
  0xf1   :  { %v197_v59 = vadd.f32 %v488_v56, %v189_v57 }
  0xf3   :  { %v198_v60 = vmax.f32 %v197_v59, 0.0 }
  0xf5   :  { %593 = vmatmul.mubr.f32.vlgmr.msra.gmra.mrb[0].mxu0 %v198_v60 }
  0xf6   :  { %662 = vmatprep.mubr.msk.f32.mxu0 %vm776_vm0, %v775_v0  ;;  %719 = vmatpush3.bf16.msra.mxu0 %v718_v5  ;;  %v392_v0 = vld [vmem:[#allocation2 + $0x230] sm:$0xff] }
  0xf7   :  { %720 = vmatprep.subr.bf16.mxu0 %v777_v1  ;;  %v727_v12 = vpack.c.bf16 %v393_v11, %v392_v0 }
  0xfa   :  { %722 = vmatpush3.bf16.msra.mxu0 %v721_v7 }
  0xfb   :  { %723 = vmatprep.subr.bf16.mxu0 %v777_v1 }
  0xfe   :  { %725 = vmatpush3.bf16.msra.mxu0 %v724_v10 }
  0xff   :  { %726 = vmatprep.subr.bf16.mxu0 %v777_v1 }
 0x102   :  { %728 = vmatpush3.bf16.msra.mxu0 %v727_v12 }
 0x103   :  { %729 = vmatprep.subr.bf16.mxu0 %v777_v1 }
 0x106   :  { %731 = vmatpush3.bf16.msra.mxu0 %v730_v15 }
 0x107   :  { %732 = vmatprep.subr.bf16.mxu0 %v777_v1 }
 0x10a   :  { %734 = vmatpush3.bf16.msra.mxu0 %v733_v18 }
 0x10b   :  { %735 = vmatprep.subr.bf16.mxu0 %v777_v1 }
 0x10e   :  { %737 = vmatpush3.bf16.msra.mxu0 %v736_v21 }
 0x10f   :  { %738 = vmatprep.subr.bf16.mxu0 %v777_v1 }
 0x112   :  { %740 = vmatpush3.bf16.msra.mxu0 %v739_v29 }
 0x1c8   :  { %v287_v23 = vpop.f32.mrb[0].mxu0 }
 0x1c9   :  { %v288_v24 = vadd.f32 %v489_v22, %v287_v23  ;;  %v594_v25 = vpop.f32.mrb[1].mxu0 }
 0x1cb   :  { %v291_v26 = vmax.f32 %v288_v24, 0.0 }
 0x1cd   :  { %628 = vmatmul.mubr.f32.vlgmr.msra.gmra.mrb[4].mxu1 %v291_v26 }
 0x2a0   :  { %v380_v31 = vpop.f32.mrb[4].mxu1 }
 0x2a1   :  { %v381_v32 = vadd.f32 %v490_v30, %v380_v31  ;;  %v629_v1 = vpop.f32.mrb[5].mxu1 }
 0x2a3   :  { %v384_v33 = vmax.f32 %v381_v32, 0.0 }
 0x2a5   :  { %663 = vmatmul.mubr.f32.vlgmr.msra.gmra.mrb[2].mxu0 %v384_v33 }
 0x378   :  { %v473_v35 = vpop.f32.mrb[2].mxu0 }
 0x379   :  { %v474_v36 = vadd.f32 %v491_v34, %v473_v35  ;;  %v664_v37 = vpop.f32.mrb[3].mxu0 }
 0x37b   :  { %478 = vst.msk [vmem:[%s877_s4] sm:$0xff] %vm477_vm6, %v474_v36 }
 0x37c   :  { %483 = vsyncpa [#allocation3], 1 }

</bundles_post_ra>
